<compile_context>
chip_gen: v5e
topology: v5e:2x2
jax: 0.10.0
libtpu: 0.0.40
codegen_flags: <defaults>
</compile_context>

<pallas_src>
import functools

import jax
import jax.numpy as jnp
import numpy as np
from jax import lax
from jax.experimental import pallas as pl
from jax.experimental.pallas import tpu as pltpu


def _round_up(n, m):
    return ((n + m - 1) // m) * m


def pcen_kernel(l_ref, c_ref, *args, eps, alpha, delta, r, last_tb, last_row,
                seeded):
    """One (TB, F) time block of one batch element.

    l_ref:     (TB, TB) f32   Ls[i,j] = s*(1-s)^(i-j), lower triangular
    c_ref:     (TB, 1)  f32   cvec[i] = (1-s)^(i+1)
    init_ref:  (1, F)         previous-call last_state (seeded path only)
    x_ref:     (TB, F)        input frames for this time block
    o_ref:     (TB, F)        PCEN output block
    ls_ref:    (1, F)         last_state output (written on block `last_tb`)
    carry_ref: (1, F)  f32    M carry across time blocks (VMEM scratch)
    """
    if seeded:
        init_ref, x_ref, o_ref, ls_ref, carry_ref = args
    else:
        x_ref, o_ref, ls_ref, carry_ref = args

    tb = pl.program_id(1)
    x = x_ref[...].astype(jnp.float32)                  # (TB, F)

    # First time block of this batch element: initialize the IIR carry.
    #   empty path:  virtual M[-1] = x[0]  ->  M[0] = (1-s)*x[0] + s*x[0] = x[0]
    #   seeded path: M[-1] = last_state    ->  M[0] = (1-s)*ls + s*x[0]
    @pl.when(tb == 0)
    def _init_carry():
        if seeded:
            carry_ref[...] = init_ref[...].astype(jnp.float32)
        else:
            carry_ref[...] = x[0:1, :]

    m_prev = carry_ref[...]                             # (1, F)

    # Blocked IIR scan as a lower-triangular matmul on the MXU:
    #   M[i] = sum_{j<=i} s*(1-s)^(i-j) * x[j]  +  (1-s)^(i+1) * m_prev
    M = (jnp.dot(l_ref[...], x, preferred_element_type=jnp.float32)
         + c_ref[...] * m_prev)                         # (TB, F)
    carry_ref[...] = M[-1:, :]

    # Dense elementwise PCEN pass over the whole tile, reduced EUP work:
    #   x / (M+eps)**alpha  ->  x * exp(-alpha * log(M+eps))
    smooth = jnp.exp(-alpha * jnp.log(M + eps))
    y = x * smooth + delta
    if abs(r - 0.25) < 1e-12:
        yr = jnp.sqrt(jnp.sqrt(y))                      # y**0.25 without a pow
    elif abs(r - 0.5) < 1e-12:
        yr = jnp.sqrt(y)
    else:
        yr = jnp.exp(r * jnp.log(y))
    delta_r = float(delta) ** float(r)
    o_ref[...] = (yr - delta_r).astype(o_ref.dtype)

    # last_state = M[T-1]; it lives in time block `last_tb` at row `last_row`.
    @pl.when(tb == last_tb)
    def _write_last_state():
        ls_ref[...] = M[last_row:last_row + 1, :].astype(ls_ref.dtype)


def pcen_forward(x, last_state=None, *, eps=1e-6, s=0.025, alpha=0.98,
                 delta=2.0, r=0.25, time_block=256):
    """PCEN forward. Returns (pcen, new_last_state).

    x: (B, T, n_mels); pcen: same shape/dtype; new_last_state: (B, 1, n_mels).
    last_state=None     -> empty=True path  (M[0] = x[0]).
    last_state=(B,1,F)  -> empty=False path (M[0] = (1-s)*last_state + s*x[0]).
    """
    B, T, F = x.shape
    # Time-block size: 256 matches the v6e/v7x MXU; 128 is enough on v5e.
    # Clamp for short sequences, keep a multiple of 8 for sublane alignment.
    TB = int(min(time_block, _round_up(T, 8)))
    Tp = _round_up(T, TB)
    x_in = x if Tp == T else jnp.pad(x, ((0, 0), (0, Tp - T), (0, 0)))
    n_tb = Tp // TB

    decay = 1.0 - s
    idx = np.arange(TB)
    expo = idx[:, None] - idx[None, :]
    Ls = np.where(expo >= 0, s * np.power(decay, np.maximum(expo, 0)), 0.0)
    Ls = jnp.asarray(Ls, dtype=jnp.float32)                                   # (TB, TB)
    cvec = jnp.asarray(np.power(decay, idx + 1)[:, None], dtype=jnp.float32)  # (TB, 1)

    last_tb = (T - 1) // TB
    last_row = (T - 1) % TB
    seeded = last_state is not None

    kernel = functools.partial(
        pcen_kernel, eps=float(eps), alpha=float(alpha), delta=float(delta),
        r=float(r), last_tb=last_tb, last_row=last_row, seeded=seeded)

    in_specs = [
        pl.BlockSpec((TB, TB), lambda b, t: (0, 0)),                   # Ls
        pl.BlockSpec((TB, 1), lambda b, t: (0, 0)),                    # cvec
    ]
    inputs = [Ls, cvec]
    if seeded:
        ls_in = jnp.broadcast_to(
            jnp.asarray(last_state, dtype=x.dtype).reshape(B, 1, F), (B, 1, F))
        in_specs.append(
            pl.BlockSpec((pl.Squeezed(), 1, F), lambda b, t: (b, 0, 0)))  # seed
        inputs.append(ls_in)
    in_specs.append(
        pl.BlockSpec((pl.Squeezed(), TB, F), lambda b, t: (b, t, 0)))     # x
    inputs.append(x_in)

    out_p, ls = pl.pallas_call(
        kernel,
        out_shape=(
            jax.ShapeDtypeStruct((B, Tp, F), x.dtype),
            jax.ShapeDtypeStruct((B, 1, F), x.dtype),
        ),
        grid=(B, n_tb),
        in_specs=in_specs,
        out_specs=(
            pl.BlockSpec((pl.Squeezed(), TB, F), lambda b, t: (b, t, 0)),  # pcen
            pl.BlockSpec((pl.Squeezed(), 1, F), lambda b, t: (b, 0, 0)),   # last_state
        ),
        scratch_shapes=[pltpu.VMEM((1, F), jnp.float32)],                  # M carry
        compiler_params=pltpu.CompilerParams(
            dimension_semantics=("parallel", "arbitrary")),
    )(*inputs)

    out = out_p if Tp == T else out_p[:, :T, :]
    return out, ls


class PCEN:
    """Minimal stateful wrapper mirroring the nn.Module (Python-side state)."""

    def __init__(self, n_mels, eps=1e-6, s=0.025, alpha=0.98, delta=2.0, r=0.25):
        self.n_mels = n_mels
        self.eps, self.s, self.alpha, self.delta, self.r = eps, s, alpha, delta, r
        self.last_state = None
        self.reset()

    def reset(self):
        self.empty = True

    def __call__(self, x):
        out, ls = pcen_forward(
            x, None if self.empty else self.last_state,
            eps=self.eps, s=self.s, alpha=self.alpha, delta=self.delta, r=self.r)
        self.last_state = ls
        self.empty = False
        return out


def pcen_reference(x, last_state=None, *, eps=1e-6, s=0.025, alpha=0.98,
                   delta=2.0, r=0.25):
    """Pure-JAX reference matching the PyTorch loop. Returns (pcen, last_state)."""
    x32 = x.astype(jnp.float32)

    def step(m, frame):
        m_new = (1.0 - s) * m + s * frame
        return m_new, m_new

    if last_state is None:
        m0 = x32[:, 0, :]
        _, m_rest = lax.scan(step, m0, jnp.moveaxis(x32[:, 1:, :], 1, 0))
        M = jnp.concatenate([m0[:, None, :], jnp.moveaxis(m_rest, 0, 1)], axis=1)
    else:
        init = jnp.asarray(last_state, dtype=jnp.float32).reshape(x.shape[0], -1)
        _, m_all = lax.scan(step, init, jnp.moveaxis(x32, 1, 0))
        M = jnp.moveaxis(m_all, 0, 1)
    pcen = jnp.power(x32 / jnp.power(M + eps, alpha) + delta, r) - delta ** r
    return pcen.astype(x.dtype), M[:, -1:, :].astype(x.dtype)


if __name__ == "__main__":
    N_MELS = 128  # conf.features.n_mels

    def check(B, T, time_block, last_state=None):
        key = jax.random.PRNGKey(0)
        x = jax.random.uniform(key, (B, T, N_MELS), dtype=jnp.float32,
                               minval=0.0, maxval=4.0)
        out, ls = pcen_forward(x, last_state, time_block=time_block)
        out = jax.block_until_ready(out)
        ls = jax.block_until_ready(ls)
        ref, ls_ref = pcen_reference(x, last_state)
        ref = jax.block_until_ready(ref)
        assert out.shape == (B, T, N_MELS) and out.dtype == x.dtype
        assert ls.shape == (B, 1, N_MELS)
        np.testing.assert_allclose(np.asarray(out), np.asarray(ref),
                                   rtol=1e-4, atol=1e-5)
        np.testing.assert_allclose(np.asarray(ls), np.asarray(ls_ref),
                                   rtol=1e-4, atol=1e-5)
        return ls

    # Single time block (T <= TB), empty=True path.
    check(B=2, T=16, time_block=256)
    # Multiple time blocks + time-padding path (carry crosses block boundaries).
    ls_prev = check(B=2, T=300, time_block=128)
    # Seeded (empty=False) path: IIR starts from the previous call's state.
    check(B=2, T=300, time_block=128, last_state=ls_prev)

    # Stateful wrapper (mirrors the nn.Module's buffer/empty-flag handling).
    pcen_mod = PCEN(N_MELS)
    x = jax.random.uniform(jax.random.PRNGKey(0), (2, 64, N_MELS),
                           dtype=jnp.float32, minval=0.0, maxval=4.0)
    y1 = jax.block_until_ready(pcen_mod(x))   # first call: empty=True
    y2 = jax.block_until_ready(pcen_mod(x))   # second call: seeded from last_state
    assert y1.shape == y2.shape == x.shape

    print("KERNEL_OK")
</pallas_src>

<mosaic_0001>
module attributes {stable_mosaic.version = 11 : i64} {
  func.func @pcen_kernel(%arg0: i32, %arg1: i32, %arg2: memref<16x16xf32, #tpu.memory_space<vmem>>, %arg3: memref<16x1xf32, #tpu.memory_space<vmem>>, %arg4: memref<1x16x128xf32, #tpu.memory_space<vmem>>, %arg5: memref<1x16x128xf32, #tpu.memory_space<vmem>>, %arg6: memref<1x1x128xf32, #tpu.memory_space<vmem>>, %arg7: memref<1x128xf32, #tpu.memory_space<vmem>>) attributes {dimension_semantics = [#tpu.dimension_semantics<parallel>, #tpu.dimension_semantics<arbitrary>], iteration_bounds = array<i64: 2, 1>, scalar_prefetch = 0 : i64, scratch_operands = 1 : i64, tpu.core_type = #tpu.core_type<tc>, window_params = [{pipeline_mode = #tpu.pipeline_mode<synchronous>, transform_indices = @transform_0, window_bounds = array<i64: 16, 16>}, {pipeline_mode = #tpu.pipeline_mode<synchronous>, transform_indices = @transform_1, window_bounds = array<i64: 16, 1>}, {transform_indices = @transform_2, window_bounds = array<i64: 1, 16, 128>}, {transform_indices = @transform_3, window_bounds = array<i64: 1, 16, 128>}, {transform_indices = @transform_4, window_bounds = array<i64: 1, 1, 128>}]} {
    %c0 = arith.constant 0 : index
    %c0_0 = arith.constant 0 : index
    %c0_1 = arith.constant 0 : index
    %0 = vector.load %arg4[%c0, %c0_0, %c0_1] : memref<1x16x128xf32, #tpu.memory_space<vmem>>, vector<1x16x128xf32>
    %1 = vector.shape_cast %0 : vector<1x16x128xf32> to vector<16x128xf32>
    %c0_i32 = arith.constant 0 : i32
    %2 = arith.cmpi eq, %arg1, %c0_i32 : i32
    %3 = arith.extui %2 : i1 to i32
    %c0_i32_2 = arith.constant 0 : i32
    %4 = arith.cmpi ne, %3, %c0_i32_2 : i32
    scf.if %4 {
      %34 = vector.extract_strided_slice %1 {offsets = [0, 0], sizes = [1, 128], strides = [1, 1]} : vector<16x128xf32> to vector<1x128xf32>
      %c0_20 = arith.constant 0 : index
      %c0_21 = arith.constant 0 : index
      %35 = vector.load %arg7[%c0_20, %c0_21] : memref<1x128xf32, #tpu.memory_space<vmem>>, vector<1x128xf32>
      tpu.vector_store %arg7[%c0_20, %c0_21], %34 {strides = array<i32>} : memref<1x128xf32, #tpu.memory_space<vmem>>, vector<1x128xf32>,
    } else {
    }
    %c0_3 = arith.constant 0 : index
    %c0_4 = arith.constant 0 : index
    %5 = vector.load %arg7[%c0_3, %c0_4] : memref<1x128xf32, #tpu.memory_space<vmem>>, vector<1x128xf32>
    %c0_5 = arith.constant 0 : index
    %c0_6 = arith.constant 0 : index
    %6 = vector.load %arg2[%c0_5, %c0_6] : memref<16x16xf32, #tpu.memory_space<vmem>>, vector<16x16xf32>
    %cst = arith.constant dense<0.000000e+00> : vector<16x128xf32>
    %7 = tpu.matmul %6, %1, %cst {dimension_numbers = #tpu.dot_dimension_numbers<[1], [0], [0], [1], [0, 0, 1, 1], [], []>} : vector<16x16xf32>, vector<16x128xf32>, vector<16x128xf32> -> vector<16x128xf32>
    %c0_7 = arith.constant 0 : index
    %c0_8 = arith.constant 0 : index
    %8 = vector.load %arg3[%c0_7, %c0_8] : memref<16x1xf32, #tpu.memory_space<vmem>>, vector<16x1xf32>
    %9 = vector.broadcast %8 : vector<16x1xf32> to vector<16x128xf32>
    %10 = vector.broadcast %5 : vector<1x128xf32> to vector<16x128xf32>
    %11 = arith.mulf %9, %10 : vector<16x128xf32>
    %12 = arith.addf %7, %11 : vector<16x128xf32>
    %13 = vector.extract_strided_slice %12 {offsets = [15, 0], sizes = [1, 128], strides = [1, 1]} : vector<16x128xf32> to vector<1x128xf32>
    %c0_9 = arith.constant 0 : index
    %c0_10 = arith.constant 0 : index
    %14 = vector.load %arg7[%c0_9, %c0_10] : memref<1x128xf32, #tpu.memory_space<vmem>>, vector<1x128xf32>
    tpu.vector_store %arg7[%c0_9, %c0_10], %13 {strides = array<i32>} : memref<1x128xf32, #tpu.memory_space<vmem>>, vector<1x128xf32>,
    %cst_11 = arith.constant 9.99999997E-7 : f32
    %15 = vector.broadcast %cst_11 : f32 to vector<16x128xf32>
    %16 = arith.addf %12, %15 : vector<16x128xf32>
    %17 = math.log %16 : vector<16x128xf32>
    %cst_12 = arith.constant -9.800000e-01 : f32
    %18 = vector.broadcast %cst_12 : f32 to vector<16x128xf32>
    %19 = arith.mulf %18, %17 : vector<16x128xf32>
    %20 = math.exp %19 : vector<16x128xf32>
    %21 = arith.mulf %1, %20 : vector<16x128xf32>
    %cst_13 = arith.constant 2.000000e+00 : f32
    %22 = vector.broadcast %cst_13 : f32 to vector<16x128xf32>
    %23 = arith.addf %21, %22 : vector<16x128xf32>
    %24 = math.sqrt %23 : vector<16x128xf32>
    %25 = math.sqrt %24 : vector<16x128xf32>
    %cst_14 = arith.constant 1.18920708 : f32
    %26 = vector.broadcast %cst_14 : f32 to vector<16x128xf32>
    %27 = arith.subf %25, %26 : vector<16x128xf32>
    %c0_15 = arith.constant 0 : index
    %c0_16 = arith.constant 0 : index
    %c0_17 = arith.constant 0 : index
    %28 = vector.load %arg5[%c0_15, %c0_16, %c0_17] : memref<1x16x128xf32, #tpu.memory_space<vmem>>, vector<1x16x128xf32>
    %29 = vector.shape_cast %28 : vector<1x16x128xf32> to vector<16x128xf32>
    %30 = vector.shape_cast %27 : vector<16x128xf32> to vector<1x16x128xf32>
    tpu.vector_store %arg5[%c0_15, %c0_16, %c0_17], %30 {strides = array<i32>} : memref<1x16x128xf32, #tpu.memory_space<vmem>>, vector<1x16x128xf32>,
    %c0_i32_18 = arith.constant 0 : i32
    %31 = arith.cmpi eq, %arg1, %c0_i32_18 : i32
    %32 = arith.extui %31 : i1 to i32
    %c0_i32_19 = arith.constant 0 : i32
    %33 = arith.cmpi ne, %32, %c0_i32_19 : i32
    scf.if %33 {
      %34 = vector.extract_strided_slice %12 {offsets = [15, 0], sizes = [1, 128], strides = [1, 1]} : vector<16x128xf32> to vector<1x128xf32>
      %c0_20 = arith.constant 0 : index
      %c0_21 = arith.constant 0 : index
      %c0_22 = arith.constant 0 : index
      %35 = vector.load %arg6[%c0_20, %c0_21, %c0_22] : memref<1x1x128xf32, #tpu.memory_space<vmem>>, vector<1x1x128xf32>
      %36 = vector.shape_cast %35 : vector<1x1x128xf32> to vector<1x128xf32>
      %37 = vector.shape_cast %34 : vector<1x128xf32> to vector<1x1x128xf32>
      tpu.vector_store %arg6[%c0_20, %c0_21, %c0_22], %37 {strides = array<i32>} : memref<1x1x128xf32, #tpu.memory_space<vmem>>, vector<1x1x128xf32>,
    } else {
    }
    return
  }
  func.func @transform_0(%arg0: i32, %arg1: i32) -> (i32, i32) {
    %c0_i32 = arith.constant 0 : i32
    %c0_i32_0 = arith.constant 0 : i32
    %c0_i32_1 = arith.constant 0 : i32
    return %c0_i32, %c0_i32_0 : i32, i32
  }
  func.func @transform_1(%arg0: i32, %arg1: i32) -> (i32, i32) {
    %c0_i32 = arith.constant 0 : i32
    %c0_i32_0 = arith.constant 0 : i32
    %c0_i32_1 = arith.constant 0 : i32
    return %c0_i32, %c0_i32_0 : i32, i32
  }
  func.func @transform_2(%arg0: i32, %arg1: i32) -> (i32, i32, i32) {
    %c0_i32 = arith.constant 0 : i32
    %c0_i32_0 = arith.constant 0 : i32
    return %arg0, %arg1, %c0_i32 : i32, i32, i32
  }
  func.func @transform_3(%arg0: i32, %arg1: i32) -> (i32, i32, i32) {
    %c0_i32 = arith.constant 0 : i32
    %c0_i32_0 = arith.constant 0 : i32
    return %arg0, %arg1, %c0_i32 : i32, i32, i32
  }
  func.func @transform_4(%arg0: i32, %arg1: i32) -> (i32, i32, i32) {
    %c0_i32 = arith.constant 0 : i32
    %c0_i32_0 = arith.constant 0 : i32
    %c0_i32_1 = arith.constant 0 : i32
    return %arg0, %c0_i32, %c0_i32_0 : i32, i32, i32
  }
}

</mosaic_0001>

<bundles_post_ra>
// kernel: tpu_custom_call.1
= control target key start
LH: loop header
LB: loop body
LE: loop exit
PB: predicated region body
PF: predicated region fallthrough
CT: control target
= control target key end

     0   :  { %10 = vsyncpa [#allocation4], 0  ;;  %s974_s0 = inlined_call_operand.vmem [shape: f32[16,16], index: 0, kind: input, shape index: {}]   ;;  %s975_s1 = inlined_call_operand.vmem [shape: f32[16,1], index: 1, kind: input, shape index: {}]   ;;  %s976_s2 = inlined_call_operand.hbm [shape: f32[2,16,128], index: 2, kind: input, shape index: {}]   ;;  %s977_s3 = inlined_call_operand.hbm [shape: f32[2,16,128], index: 3, kind: output, shape index: {0}]   ;;  %s978_s4 = inlined_call_operand.hbm [shape: f32[2,1,128], index: 4, kind: output, shape index: {1}]  }
   0x1   :  { %12 = vsyncpa [#allocation4 + $0x1], 0 }
   0x2   :  { %13 = vsyncpa [#allocation5], 0 }
   0x3   :  { %15 = vsyncpa [#allocation5 + $0x1], 0 }
   0x4   :  { %16 = vsyncpa [#allocation8], 0 }
   0x5   :  { %18 = vsyncpa [#allocation8 + $0x1], 0  ;;  %s817_s15 = smov 0   ;;  %s819_s16 = smov 0  }
   0x6   :  { %s821_s17 = smov 0   ;;  %s823_s18 = smov 0  }
   0x7   :  { %s825_s19 = smov 0   ;;  %s827_s20 = smov 0  }
   0x8 LB: > { %s528_s21 = sadd.s32 4294967295, %s785_s20   ;;  %s529_s22 = sadd.s32 4294967294, %s785_s20   ;;  %s785_s20 = sphi %s827_s20, %s24_s20   ;;  %s781_s19 = sphi %s825_s19, %s987_s19   ;;  %s777_s18 = sphi %s823_s18, %s986_s18   ;;  %s773_s17 = sphi %s821_s17, %s985_s17   ;;  %s769_s16 = sphi %s819_s16, %s984_s16   ;;  %s765_s15 = sphi %s817_s15, %s983_s15  }
   0x9   : > { %s36_s23 = sadd.s32 1, %s781_s19  ;;  %s87_s24 = sadd.s32 1, %s773_s17 }
   0xa   : > { %p38_p0 = scmp.ge.s32.totalorder %s36_s23, 2  ;;  %p94_p1 = scmp.ne.s32.totalorder %s773_s17, %s769_s16 }
   0xb   : > { %p95_p2 = scmp.eq.s32.totalorder %s785_s20, 0  ;;  %p100_p3 = scmp.ne.s32.totalorder %s769_s16, %s765_s15 }
   0xc   : > { %s989_s23 = smov (%p38_p0, %s36_s23), 0  ;;  %p101_p5 = scmp.eq.s32.totalorder %s528_s21, 0 }
   0xd   : > { %p858_p4 = por %p95_p2, %p94_p1  ;;  %s82_s26 = ssub.s32 %s781_s19, %s989_s23 }
   0xe   : > { %p126_p6 = scmp.eq.s32.totalorder %s528_s21, 1  ;;  %p85_p7 = scmp.eq.s32.totalorder %s82_s26, 0 }
   0xf   : > { %p864_p8 = por %p101_p5, %p100_p3  ;;  %p132_p10 = scmp.eq.s32.totalorder %s529_s22, 1 }
  0x10   : > { %p868_p9 = por %p126_p6, %p94_p1  ;;  %p531_p12 = scmp.ge.s32.totalorder %s785_s20, 2 }
  0x11   : > { %s873_s29 = scalar_select %p85_p7, %s773_s17, %s87_s24  }
  0x12   : > { %p875_p11 = por %p132_p10, %p100_p3  ;;  %p568_p13 = scmp.lt.s32.totalorder %s785_s20, 2 }
  0x13   : > { %s184_s5 = sand.u32 1, %s773_s17   ;;  %s547_s7 = sshll.u32 %s781_s19, 4 }
  0x14   : > { %s532_s6 = sshll.u32 %s184_s5, 4  ;;  %s195_s10 = scalar_lea.hbm %s976_s2, %s547_s7 }
  0x15   : > { %s188_s11 = scalar_lea.vmem [#allocation3], %s532_s6  ;;  %s196_s13 = sshll.u32 %s195_s10, 4  ;;  %s197_s13 = int_to_ptr.hbm [resolvable:$true] %s196_s13 }
  0x16   : > { %s198_s12 = sshll.u32 %s188_s11, 4  ;;  %p558_p0 = pnand %p568_p13, %p858_p4  ;;  %s199_s12 = int_to_ptr.vmem [resolvable:$true] %s198_s12 }
  0x17   : > { %p535_p1 = scmp.ge.s32.totalorder %s785_s20, 1  ;;  %s185_s14 = scalar_lea.sflag [#allocation4], %s184_s5 }
  0x18   : > { %s787_s21 = smov 128   ;;  %s788_s22 = smov 8  }
  0x19   : > { %560 = dma.hbm_to_vmem [thread:$0]  (!%p558_p0), %s197_s13, 256, %s199_s12, %s185_s14, %s787_s21, %s787_s21, %s788_s22  }
  0x1a   : > { %p206_p2 = scmp.lt.s32.totalorder %s785_s20, 3 }
  0x1c   : > { %p207_p3 = pnand %p535_p1, %p206_p2 }
  0x1d   : > { %s891_s24 = sand.u32 (!%p207_p3), 1, %s769_s16  }
  0x1e   : > { %210 = sbr.rel (%p207_p3) target bundleno = 244 (0xf4), region = 32  ;;  %s536_s26 = sshll.u32 (!%p207_p3), %s891_s24, 4 }
  0x1f   : > { %s213_s6 = scalar_lea.sflag (!%p207_p3), [#allocation4], %s891_s24  ;;  %s216_s25 = scalar_lea.vmem (!%p207_p3), [#allocation3], %s536_s26 }
  0x23   : > { %752 = dma.done.wait (%p864_p8), %s213_s6, 256  }
  0x24   : > { %754 = vsyncadd (%p864_p8), %s213_s6, 4294967040  ;;  %v789_v0 = vmov 0   ;;  %v258_v1 = vld [vmem:[%s975_s1] sm:$0xff]  ;;  %vm275_vm0 = vcmask 130048   ;;  %v257_v5 = vld [vmem:[%s974_s0 + $0x8] sm:$0xff]  ;;  %s411_s21 = scalar_lea.hbm %s978_s4, %s777_s18  ;;  %s245_s22 = scalar_lea.vmem [#allocation7], %s891_s24 }
  0x25   : > { %623 = vset.pattern.permute.xlu0 %v789_v0  ;;  %v904_v2 = vld [vmem:[%s216_s25 + $0x8] sm:$0xff]  ;;  %v248_v3 = vld [vmem:[%s216_s25] sm:$0xff]  ;;  %s413_s6 = sshll.u32 %s245_s22, 4  ;;  %s415_s25 = sshll.u32 %s411_s21, 4  ;;  %s414_s6 = int_to_ptr.vmem [resolvable:$true] %s413_s6  ;;  %s416_s25 = int_to_ptr.hbm [resolvable:$true] %s415_s25 }
  0x26   : > { %262 = vperm.xlu0 %623, %v258_v1   ;;  %296 = vmatpush.msra.mxu0 %v904_v2  ;;  %254 = vst [vmem:[#allocation2] sm:$0x1] %v248_v3  ;;  %v256_v4 = vld [vmem:[%s974_s0] sm:$0xff]  ;;  %v259_v6 = vld [vmem:[%s975_s1 + $0x8] sm:$0xff]  ;;  %s384_s5 = scalar_lea.sflag [#allocation8], %s891_s24  ;;  %s685_s7 = sshra.s32 %s416_s25, 4  ;;  %s686_s7 = int_to_ptr.hbm [resolvable:$true] %s685_s7 }
  0x27   : > { %549 = vmatpush.msra.mxu1 %v904_v2  ;;  %s687_s8 = scalar_lea.hbm %s686_s7, 1  ;;  %s691_s10 = scalar_lea.hbm %s978_s4, 2 }
  0x28   : > { %297 = vmatpush.msra.mxu0 %v248_v3  ;;  %p688_p4 = scmp.ne.s32.totalorder %s686_s7, %s687_s8  ;;  %p692_p7 = scmp.lt.s32.totalorder %s686_s7, %s978_s4 }
  0x29   : > { %550 = vmatpush.msra.mxu1 %v248_v3  ;;  %538 = vmatmul.msk.f32.vlgmr.msra.gmra.mxu0 %vm275_vm0, %v256_v4  ;;  %p693_p8 = scmp.lt.s32.totalorder %s691_s10, %s687_s8 }
  0x2a   : > { %539 = vmatmul.msk.f32.vlgmr.msra.gmra.mxu1 %vm275_vm0, %v257_v5  ;;  %p689_p5 = pnand %p688_p4, %p868_p9 }
  0x2b   : > { %p694_p10 = por %p693_p8, %p692_p7 }
  0x2c   : > { %p690_p6 = pneg %p689_p5 }
  0x2d   : > { %v624_v8 = vld [vmem:[#allocation2] ss:$0 sm:$0xff] }
  0x2e   : > { %267 = vperm.xlu0 %623, %v259_v6   ;;  %p695_p13 = pnand %p694_p10, %p690_p6 }
  0x98   : > { %v263_v7 = vpop.permute.xlu0 %262 }
  0x99   : > { %v273_v10 = vmul.f32 %v624_v8, %v263_v7 }
  0xa0   : > { %v268_v9 = vpop.permute.xlu0 %267 }
  0xa1   : > { %v274_v11 = vmul.f32 %v624_v8, %v268_v9 }
  0xa6   : > { %v299_v12 = vpop.f32.mrf.mxu0 }
  0xa7   : > { %v300_v13 = vadd.f32 %v299_v12, %v273_v10  ;;  %v302_v14 = vpop.f32.mrf.mxu1 }
  0xa8   : > { %v303_v15 = vadd.f32 %v302_v14, %v274_v11 }
  0xa9   : > { %v306_v16 = vadd.f32 1e-06, %v300_v13 }
  0xaa   : > { %305 = vst [vmem:[#allocation2 - $0x7] sm:$0x80] %v303_v15  ;;  %v307_v17 = vadd.f32 1e-06, %v303_v15 }
  0xab   : > { %625 = vlog2.f32 %v306_v16  ;;  %377 = vst [vmem:[%s245_s22 - $0x7] sm:$0x80] %v303_v15 }
  0xac   : > { %627 = vlog2.f32 %v307_v17 }
  0xad   : > { %698 = shalt.err (!%p695_p13)
}
  0xae   : > { %554 = dma.vmem_to_hbm [thread:$0]  (%p868_p9), %s414_s6, 16, %s416_s25, %s384_s5  }
  0xaf   : > { %s548_s13 = sshll.u32 %s777_s18, 4  ;;  %s239_s6 = scalar_lea.vmem [#allocation6], %s536_s26 }
  0xb0   : > { %s396_s22 = scalar_lea.hbm %s977_s3, %s548_s13  ;;  %s397_s25 = sshll.u32 %s239_s6, 4  ;;  %s398_s25 = int_to_ptr.vmem [resolvable:$true] %s397_s25 }
  0xb1   : > { %v626_v18 = vpop.eup %625  ;;  %s399_s5 = sshll.u32 %s396_s22, 4  ;;  %s379_s18 = scalar_lea.sflag [#allocation5], %s891_s24  ;;  %s400_s5 = int_to_ptr.hbm [resolvable:$true] %s399_s5 }
  0xb2   : > { %v628_v19 = vpop.eup %627  ;;  %v309_v20 = vmul.f32 0.6931472, %v626_v18  ;;  %s713_s26 = sshra.s32 %s400_s5, 4  ;;  %s719_s27 = scalar_lea.hbm %s977_s3, 32  ;;  %s714_s26 = int_to_ptr.hbm [resolvable:$true] %s713_s26 }
  0xb3   : > { %v311_v21 = vmul.f32 0.6931472, %v628_v19  ;;  %s715_s7 = scalar_lea.hbm %s714_s26, 16  ;;  %p720_p3 = scmp.lt.s32.totalorder %s714_s26, %s977_s3 }
  0xb4   : > { %v312_v22 = vmul.f32 -0.98, %v309_v20  ;;  %p716_p0 = scmp.ne.s32.totalorder %s714_s26, %s715_s7  ;;  %p721_p4 = scmp.lt.s32.totalorder %s719_s27, %s715_s7 }
  0xb5   : > { %v313_v23 = vmul.f32 -0.98, %v311_v21 }
  0xb6   : > { %v314_v24 = vmul.f32 1.442695, %v312_v22  ;;  %p717_p1 = pnand %p716_p0, %p868_p9  ;;  %p722_p5 = por %p721_p4, %p720_p3 }
  0xb7   : > { %v316_v25 = vmul.f32 1.442695, %v313_v23 }
  0xb8   : > { %629 = vpow2.f32 %v314_v24  ;;  %p718_p2 = pneg %p717_p1 }
  0xb9   : > { %631 = vpow2.f32 %v316_v25 }
  0xba   : > { %p723_p6 = pnand %p722_p5, %p718_p2 }
  0xbe   : > { %v630_v26 = vpop.eup %629 }
  0xbf   : > { %v632_v27 = vpop.eup %631  ;;  %v318_v28 = vmul.f32 %v630_v26, %v248_v3 }
  0xc0   : > { %v319_v29 = vmul.f32 %v632_v27, %v904_v2 }
  0xc1   : > { %v320_v30 = vadd.f32 2.0, %v318_v28 }
  0xc2   : > { %v321_v31 = vadd.f32 2.0, %v319_v29 }
  0xc3   : > { %633 = vrsqrt.f32 %v320_v30  ;;  %vm329_vm1 = vcmp.eq.f32.partialorder %v320_v30, inf  ;;  %v332_v45 = vand.u32 2147483648, %v320_v30  ;;  %vm331_vm2 = vcmp.eq.f32.partialorder %v320_v30, 0.0 }
  0xc4   : > { %635 = vrsqrt.f32 %v321_v31  ;;  %vm341_vm3 = vcmp.eq.f32.partialorder %v321_v31, inf  ;;  %v344_v48 = vand.u32 2147483648, %v321_v31  ;;  %vm343_vm4 = vcmp.eq.f32.partialorder %v321_v31, 0.0 }
  0xc9   : > { %v634_v32 = vpop.eup %633 }
  0xca   : > { %v636_v33 = vpop.eup %635  ;;  %v323_v34 = vmul.f32 %v634_v32, %v320_v30 }
  0xcb   : > { %v335_v35 = vmul.f32 %v636_v33, %v321_v31 }
  0xcc   : > { %v324_v36 = vmul.f32 %v634_v32, %v323_v34 }
  0xcd   : > { %v336_v37 = vmul.f32 %v636_v33, %v335_v35 }
  0xce   : > { %v325_v38 = vmul.f32 0.5, %v324_v36 }
  0xcf   : > { %v337_v39 = vmul.f32 0.5, %v336_v37 }
  0xd0   : > { %v326_v40 = vsub.f32 1.5, %v325_v38 }
  0xd1   : > { %v338_v41 = vsub.f32 1.5, %v337_v39 }
  0xd2   : > { %v327_v42 = vmul.f32 %v634_v32, %v326_v40 }
  0xd3   : > { %v339_v43 = vmul.f32 %v636_v33, %v338_v41 }
  0xd4   : > { %v328_v44 = vmul.f32 %v327_v42, %v320_v30 }
  0xd5   : > { %v340_v46 = vmul.f32 %v339_v43, %v321_v31 }
  0xd6   : > { %v330_v47 = vsel %vm329_vm1, %v320_v30, %v328_v44 }
  0xd7   : > { %v333_v49 = vsel %vm331_vm2, %v332_v45, %v330_v47  ;;  %v342_v50 = vsel %vm341_vm3, %v321_v31, %v340_v46 }
  0xd8   : > { %v345_v51 = vsel %vm343_vm4, %v344_v48, %v342_v50  ;;  %637 = vrsqrt.f32 %v333_v49  ;;  %vm353_vm5 = vcmp.eq.f32.partialorder %v333_v49, inf  ;;  %v356_v1 = vand.u32 2147483648, %v333_v49 }
  0xd9   : > { %639 = vrsqrt.f32 %v345_v51  ;;  %vm355_vm6 = vcmp.eq.f32.partialorder %v333_v49, 0.0  ;;  %vm365_vm7 = vcmp.eq.f32.partialorder %v345_v51, inf  ;;  %v368_v4 = vand.u32 2147483648, %v345_v51 }
  0xda   : > { %vm367_vm8 = vcmp.eq.f32.partialorder %v345_v51, 0.0 }
  0xde   : > { %v638_v52 = vpop.eup %637 }
  0xdf   : > { %v640_v53 = vpop.eup %639  ;;  %v347_v54 = vmul.f32 %v638_v52, %v333_v49 }
  0xe0   : > { %v359_v55 = vmul.f32 %v640_v53, %v345_v51 }
  0xe1   : > { %v348_v56 = vmul.f32 %v638_v52, %v347_v54 }
  0xe2   : > { %v360_v57 = vmul.f32 %v640_v53, %v359_v55 }
  0xe3   : > { %v349_v58 = vmul.f32 0.5, %v348_v56 }
  0xe4   : > { %v361_v59 = vmul.f32 0.5, %v360_v57 }
  0xe5   : > { %v350_v60 = vsub.f32 1.5, %v349_v58 }
  0xe6   : > { %v362_v61 = vsub.f32 1.5, %v361_v59 }
  0xe7   : > { %v351_v62 = vmul.f32 %v638_v52, %v350_v60 }
  0xe8   : > { %v363_v63 = vmul.f32 %v640_v53, %v362_v61 }
  0xe9   : > { %v352_v0 = vmul.f32 %v351_v62, %v333_v49 }
  0xea   : > { %v364_v2 = vmul.f32 %v363_v63, %v345_v51 }
  0xeb   : > { %v354_v3 = vsel %vm353_vm5, %v333_v49, %v352_v0 }
  0xec   : > { %v357_v5 = vsel %vm355_vm6, %v356_v1, %v354_v3  ;;  %v366_v6 = vsel %vm365_vm7, %v345_v51, %v364_v2 }
  0xed   : > { %v369_v7 = vsel %vm367_vm8, %v368_v4, %v366_v6  ;;  %v540_v8 = vadd.f32 -1.1892071, %v357_v5 }
  0xee   : > { %v541_v9 = vadd.f32 -1.1892071, %v369_v7 }
  0xef   : > { %372 = vst [vmem:[%s239_s6] sm:$0xff] %v540_v8 }
  0xf0   : > { %373 = vst [vmem:[%s239_s6 + $0x8] sm:$0xff] %v541_v9 }
  0xf1   : > { %726 = shalt.err (!%p723_p6)
}
  0xf2   : > { %s790_s24 = smov 128   ;;  %s791_s12 = smov 8  }
  0xf3   : > { %553 = dma.vmem_to_hbm [thread:$0]  (%p868_p9), %s398_s25, 256, %s400_s5, %s379_s18, %s790_s24, %s790_s24, %s791_s12  }
  0xf4 PF: > { %s427_s13 = sand.u32 1, %s765_s15   ;;  %p562_p7 = pnand %p531_p12, %p875_p11 }
  0xf5   : > { %s428_s14 = scalar_lea.sflag [#allocation5], %s427_s13 }
  0xf6   : > { %p563_p8 = pneg %p562_p7 }
  0xf8   : > { %756 = dma.done.wait (%p563_p8), %s428_s14, 256  }
  0xf9   : > { %758 = vsyncadd (%p563_p8), %s428_s14, 4294967040  ;;  %s438_s21 = scalar_lea.sflag [#allocation8], %s427_s13 }
  0xfa   : > { %760 = dma.done.wait (%p563_p8), %s438_s21, 16  }
  0xfb   : > { %762 = vsyncadd (%p563_p8), %s438_s21, 4294967280  ;;  %s24_s20 = sadd.s32 1, %s785_s20   ;;  %s983_s15 = smov %s769_s16 }
  0xfc   : > { %p21_p10 = scmp.ge.s32.totalorder %s24_s20, 4   ;;  %s984_s16 = smov %s773_s17 }
  0xfd   : > { %s985_s17 = smov %s873_s29  ;;  %s986_s18 = smov %s781_s19 }
  0xfe   : > { %s987_s19 = smov %s989_s23  ;;  %23 = sbr.rel (!%p21_p10) target bundleno = 8 (0x8), region = 102 }
 0x103   :  { %443 = vsyncpa [#allocation4], 1 }
 0x104   :  { %445 = vsyncpa [#allocation4 + $0x1], 1 }
 0x105   :  { %446 = vsyncpa [#allocation5], 1 }
 0x106   :  { %448 = vsyncpa [#allocation5 + $0x1], 1 }
 0x107   :  { %449 = vsyncpa [#allocation8], 1 }
 0x108   :  { %451 = vsyncpa [#allocation8 + $0x1], 1 }

</bundles_post_ra>
